<compile_context>
chip_gen: v7x
topology: tpu7x:2x2x1
jax: 0.10.0
libtpu: 0.0.40
codegen_flags: <defaults>
</compile_context>

<pallas_src>
import functools

import jax
import jax.numpy as jnp
from jax.experimental import pallas as pl
from jax.experimental.pallas import tpu as pltpu


_LANE = 128
_VPU_K_MAX = 8   # contractions this short stay on the VPU (no MXU push/drain)


def _mlp_kernel(x_ref, w_ref, b_ref, o_ref, *, layer_dims):
    """Fused MLP forward on lane-padded, VMEM-resident operands.

    x_ref: (B, P) f32    input, features zero-padded to P lanes
    w_ref: (L, P, P) f32 stacked weights, (in, out) layout, zero-padded
    b_ref: (L, 1, P) f32 stacked biases, zero-padded
    o_ref: (B, P) f32    padded output (real result in first output_dim lanes)
    """
    n_layers = len(layer_dims)
    h = x_ref[...]                                 # (B, P), stays in VMEM/vregs
    for i, (k_real, _) in enumerate(layer_dims):
        w = w_ref[i]                               # (P, P)
        b = b_ref[i]                               # (1, P)
        if k_real <= _VPU_K_MAX:
            # Tiny contraction (e.g. K=2 input layer): broadcast FMAs on the
            # VPU instead of paying MXU push + result-FIFO drain for 2 MACs.
            y = h[:, 0:1] * w[0:1, :]
            for k in range(1, k_real):
                y = y + h[:, k:k + 1] * w[k:k + 1, :]
            y = y + b
        else:
            y = jnp.dot(h, w, preferred_element_type=jnp.float32) + b
        if i == n_layers - 1:
            h = jax.nn.sigmoid(y)                  # final Sigmoid
        else:
            h = jnp.maximum(y, 0.0)                # ReLU (Dropout == identity)
    o_ref[...] = h.astype(o_ref.dtype)


def _pad2d(a, rows, cols):
    r, c = a.shape
    return jnp.pad(a, ((0, rows - r), (0, cols - c)))


def simple_net_forward(x, params):
    """SimpleNet.forward (eval mode) as a single fused Pallas kernel call."""
    B, in_dim = x.shape
    out_dim = params[-1][0].shape[1]
    widest = max([in_dim] + [w.shape[1] for w, _ in params])
    P = _LANE * pl.cdiv(widest, _LANE)             # lane-pad features to 128·n

    x_pad = _pad2d(x.astype(jnp.float32), B, P)                    # (B, P)
    w_stack = jnp.stack([_pad2d(w, P, P) for w, _ in params])      # (L, P, P)
    b_stack = jnp.stack([_pad2d(b, 1, P) for _, b in params])      # (L, 1, P)
    layer_dims = tuple((w.shape[0], w.shape[1]) for w, _ in params)

    kernel = functools.partial(_mlp_kernel, layer_dims=layer_dims)
    out_pad = pl.pallas_call(
        kernel,
        out_shape=jax.ShapeDtypeStruct((B, P), jnp.float32),
        in_specs=[
            pl.BlockSpec(memory_space=pltpu.MemorySpace.VMEM),
            pl.BlockSpec(memory_space=pltpu.MemorySpace.VMEM),
            pl.BlockSpec(memory_space=pltpu.MemorySpace.VMEM),
        ],
        out_specs=pl.BlockSpec(memory_space=pltpu.MemorySpace.VMEM),
    )(x_pad, w_stack, b_stack)
    return out_pad[:, :out_dim]


def init_params(key, input_dim, hidden_dim, num_hidden, output_dim):
    """Deterministic init matching nn.Linear's default U(-1/sqrt(fan_in), ...).

    Weights stored as (in_features, out_features) (transpose of PyTorch) so
    the kernel computes y = x @ W + b directly; biases as (1, out_features).
    """
    if num_hidden > 0:
        dims = [(input_dim, hidden_dim)]
        dims += [(hidden_dim, hidden_dim)] * (num_hidden - 1)
        dims += [(hidden_dim, output_dim)]
    else:
        dims = [(input_dim, output_dim)]

    params = []
    for fan_in, fan_out in dims:
        key, kw, kb = jax.random.split(key, 3)
        bound = 1.0 / float(fan_in) ** 0.5
        w = jax.random.uniform(kw, (fan_in, fan_out), jnp.float32, -bound, bound)
        b = jax.random.uniform(kb, (1, fan_out), jnp.float32, -bound, bound)
        params.append((w, b))
    return params


if __name__ == "__main__":
    # Moon data: 2 input features, binary output; small hidden MLP.
    input_dim, hidden_dim, num_hidden, output_dim = 2, 32, 2, 1
    batch = 8

    key = jax.random.PRNGKey(0)
    key, kx = jax.random.split(key)
    x = jax.random.normal(kx, (batch, input_dim), dtype=jnp.float32)

    params = init_params(key, input_dim, hidden_dim, num_hidden, output_dim)

    out = simple_net_forward(x, params)
    out = jax.block_until_ready(out)

    # Sanity checks: shape and sigmoid range.
    assert out.shape == (batch, output_dim), out.shape
    assert bool(jnp.all(out >= 0.0)) and bool(jnp.all(out <= 1.0))

    # Cross-check against a pure-JAX reference of the same (unpadded) math.
    ref = x
    for i, (w, b) in enumerate(params):
        ref = ref @ w + b
        ref = jax.nn.sigmoid(ref) if i == len(params) - 1 else jnp.maximum(ref, 0.0)
    assert bool(jnp.allclose(out, ref, atol=1e-5, rtol=1e-4)), (
        jnp.max(jnp.abs(out - ref)))

    print("KERNEL_OK")
</pallas_src>

<mosaic_0001>
module attributes {stable_mosaic.version = 11 : i64} {
  func.func @_mlp_kernel(%arg0: memref<8x128xf32, #tpu.memory_space<vmem>>, %arg1: memref<3x128x128xf32, #tpu.memory_space<vmem>>, %arg2: memref<3x1x128xf32, #tpu.memory_space<vmem>>, %arg3: memref<8x128xf32, #tpu.memory_space<vmem>>) attributes {dimension_semantics = [], scalar_prefetch = 0 : i64, scratch_operands = 0 : i64, tpu.core_type = #tpu.core_type<tc>} {
    %c0 = arith.constant 0 : index
    %c0_0 = arith.constant 0 : index
    %0 = vector.load %arg0[%c0, %c0_0] : memref<8x128xf32, #tpu.memory_space<vmem>>, vector<8x128xf32>
    %c0_1 = arith.constant 0 : index
    %c0_2 = arith.constant 0 : index
    %c0_3 = arith.constant 0 : index
    %1 = vector.load %arg1[%c0_1, %c0_2, %c0_3] : memref<3x128x128xf32, #tpu.memory_space<vmem>>, vector<1x128x128xf32>
    %2 = vector.shape_cast %1 : vector<1x128x128xf32> to vector<128x128xf32>
    %c0_4 = arith.constant 0 : index
    %c0_5 = arith.constant 0 : index
    %c0_6 = arith.constant 0 : index
    %3 = vector.load %arg2[%c0_4, %c0_5, %c0_6] : memref<3x1x128xf32, #tpu.memory_space<vmem>>, vector<1x1x128xf32>
    %4 = vector.shape_cast %3 : vector<1x1x128xf32> to vector<1x128xf32>
    %5 = vector.extract_strided_slice %0 {offsets = [0, 0], sizes = [8, 1], strides = [1, 1]} : vector<8x128xf32> to vector<8x1xf32>
    %6 = vector.extract_strided_slice %2 {offsets = [0, 0], sizes = [1, 128], strides = [1, 1]} : vector<128x128xf32> to vector<1x128xf32>
    %7 = vector.broadcast %5 : vector<8x1xf32> to vector<8x128xf32>
    %8 = vector.broadcast %6 : vector<1x128xf32> to vector<8x128xf32>
    %9 = arith.mulf %7, %8 : vector<8x128xf32>
    %10 = vector.extract_strided_slice %0 {offsets = [0, 1], sizes = [8, 1], strides = [1, 1]} : vector<8x128xf32> to vector<8x1xf32>
    %11 = vector.extract_strided_slice %2 {offsets = [1, 0], sizes = [1, 128], strides = [1, 1]} : vector<128x128xf32> to vector<1x128xf32>
    %12 = vector.broadcast %10 : vector<8x1xf32> to vector<8x128xf32>
    %13 = vector.broadcast %11 : vector<1x128xf32> to vector<8x128xf32>
    %14 = arith.mulf %12, %13 : vector<8x128xf32>
    %15 = arith.addf %9, %14 : vector<8x128xf32>
    %16 = vector.broadcast %4 : vector<1x128xf32> to vector<8x128xf32>
    %17 = arith.addf %15, %16 : vector<8x128xf32>
    %cst = arith.constant 0.000000e+00 : f32
    %18 = vector.broadcast %cst : f32 to vector<8x128xf32>
    %19 = arith.maximumf %17, %18 : vector<8x128xf32>
    %c1 = arith.constant 1 : index
    %c0_7 = arith.constant 0 : index
    %c0_8 = arith.constant 0 : index
    %20 = vector.load %arg1[%c1, %c0_7, %c0_8] : memref<3x128x128xf32, #tpu.memory_space<vmem>>, vector<1x128x128xf32>
    %21 = vector.shape_cast %20 : vector<1x128x128xf32> to vector<128x128xf32>
    %c1_9 = arith.constant 1 : index
    %c0_10 = arith.constant 0 : index
    %c0_11 = arith.constant 0 : index
    %22 = vector.load %arg2[%c1_9, %c0_10, %c0_11] : memref<3x1x128xf32, #tpu.memory_space<vmem>>, vector<1x1x128xf32>
    %23 = vector.shape_cast %22 : vector<1x1x128xf32> to vector<1x128xf32>
    %cst_12 = arith.constant dense<0.000000e+00> : vector<8x128xf32>
    %24 = tpu.matmul %19, %21, %cst_12 {dimension_numbers = #tpu.dot_dimension_numbers<[1], [0], [0], [1], [0, 0, 1, 1], [], []>} : vector<8x128xf32>, vector<128x128xf32>, vector<8x128xf32> -> vector<8x128xf32>
    %25 = vector.broadcast %23 : vector<1x128xf32> to vector<8x128xf32>
    %26 = arith.addf %24, %25 : vector<8x128xf32>
    %cst_13 = arith.constant 0.000000e+00 : f32
    %27 = vector.broadcast %cst_13 : f32 to vector<8x128xf32>
    %28 = arith.maximumf %26, %27 : vector<8x128xf32>
    %c2 = arith.constant 2 : index
    %c0_14 = arith.constant 0 : index
    %c0_15 = arith.constant 0 : index
    %29 = vector.load %arg1[%c2, %c0_14, %c0_15] : memref<3x128x128xf32, #tpu.memory_space<vmem>>, vector<1x128x128xf32>
    %30 = vector.shape_cast %29 : vector<1x128x128xf32> to vector<128x128xf32>
    %c2_16 = arith.constant 2 : index
    %c0_17 = arith.constant 0 : index
    %c0_18 = arith.constant 0 : index
    %31 = vector.load %arg2[%c2_16, %c0_17, %c0_18] : memref<3x1x128xf32, #tpu.memory_space<vmem>>, vector<1x1x128xf32>
    %32 = vector.shape_cast %31 : vector<1x1x128xf32> to vector<1x128xf32>
    %cst_19 = arith.constant dense<0.000000e+00> : vector<8x128xf32>
    %33 = tpu.matmul %28, %30, %cst_19 {dimension_numbers = #tpu.dot_dimension_numbers<[1], [0], [0], [1], [0, 0, 1, 1], [], []>} : vector<8x128xf32>, vector<128x128xf32>, vector<8x128xf32> -> vector<8x128xf32>
    %34 = vector.broadcast %32 : vector<1x128xf32> to vector<8x128xf32>
    %35 = arith.addf %33, %34 : vector<8x128xf32>
    %36 = arith.negf %35 : vector<8x128xf32>
    %37 = math.exp %36 : vector<8x128xf32>
    %cst_20 = arith.constant 1.000000e+00 : f32
    %38 = vector.broadcast %cst_20 : f32 to vector<8x128xf32>
    %39 = arith.addf %38, %37 : vector<8x128xf32>
    %40 = arith.divf %38, %39 : vector<8x128xf32>
    %c0_21 = arith.constant 0 : index
    %c0_22 = arith.constant 0 : index
    %41 = vector.load %arg3[%c0_21, %c0_22] : memref<8x128xf32, #tpu.memory_space<vmem>>, vector<8x128xf32>
    tpu.vector_store %arg3[%c0_21, %c0_22], %40 {strides = array<i32>} : memref<8x128xf32, #tpu.memory_space<vmem>>, vector<8x128xf32>,
    return
  }
}

</mosaic_0001>

<bundles_post_ra>
// kernel: tpu_custom_call.1
= control target key start
LH: loop header
LB: loop body
LE: loop exit
PB: predicated region body
PF: predicated region fallthrough
CT: control target
= control target key end

     0   :  { %8 = vsyncpa [#allocation3], 0  ;;  %s630_s0 = inlined_call_operand.hbm [shape: f32[8,128], index: 0, kind: input, shape index: {}]   ;;  %s631_s1 = inlined_call_operand.hbm [shape: f32[3,128,128], index: 1, kind: input, shape index: {}]   ;;  %s632_s2 = inlined_call_operand.vmem [shape: f32[3,1,128], index: 2, kind: input, shape index: {}]   ;;  %s633_s3 = inlined_call_operand.hbm [shape: f32[8,128], index: 3, kind: output, shape index: {}]  }
   0x1   :  { %9 = vsyncpa [#allocation6], 0 }
   0x2   :  { %10 = vsyncpa [#allocation4], 0  ;;  %s532_s12 = smov [#allocation2]   ;;  %s533_s14 = smov [#allocation5]  }
   0x3   :  { %s17_s13 = sshll.u32 %s532_s12, 4  ;;  %s26_s15 = sshll.u32 %s533_s14, 4  ;;  %s18_s13 = int_to_ptr.vmem [resolvable:$true] %s17_s13  ;;  %s562_s15 = int_to_ptr.vmem [resolvable:$true] %s26_s15 }
   0x4   :  { %s460_s18 = scalar_lea.hbm %s630_s0, 128 }
   0x5   :  { %p461_p0 = scmp.ne.s32.totalorder %s630_s0, %s460_s18  ;;  %p464_p1 = scmp.lt.u32.totalorder %s460_s18, %s630_s0 }
   0x7   :  { %p466_p2 = pnand %p464_p1, %p461_p0 }
   0x9   :  { %469 = shalt.err (!%p466_p2)
}
   0xa   :  { %s470_s23 = scalar_lea.vmem %s18_s13, 128  ;;  %p475_p4 = scmp.lt.s32.totalorder %s18_s13, %s18_s13 }
   0xb   :  { %p471_p3 = scmp.ne.s32.totalorder %s18_s13, %s470_s23  ;;  %p476_p5 = scmp.lt.s32.totalorder %s470_s23, %s470_s23 }
   0xd   :  { %p477_p6 = por %p476_p5, %p475_p4 }
   0xf   :  { %p478_p7 = pnand %p477_p6, %p471_p3 }
  0x11   :  { %481 = shalt.err (!%p478_p7)
}
  0x12   :  { %20 = dma.hbm_to_vmem [thread:$0]  %s630_s0, 128, %s18_s13, [#allocation3]  }
  0x13   :  { %s482_s28 = scalar_lea.hbm %s631_s1, 6144 }
  0x14   :  { %p483_p8 = scmp.ne.s32.totalorder %s631_s1, %s482_s28  ;;  %p486_p9 = scmp.lt.u32.totalorder %s482_s28, %s631_s1 }
  0x16   :  { %p488_p10 = pnand %p486_p9, %p483_p8 }
  0x18   :  { %491 = shalt.err (!%p488_p10)
}
  0x19   :  { %s492_s6 = scalar_lea.vmem %s562_s15, 6144  ;;  %p497_p12 = scmp.lt.s32.totalorder %s562_s15, %s562_s15 }
  0x1a   :  { %p493_p11 = scmp.ne.s32.totalorder %s562_s15, %s492_s6  ;;  %p498_p13 = scmp.lt.s32.totalorder %s492_s6, %s492_s6 }
  0x1c   :  { %p499_p0 = por %p498_p13, %p497_p12 }
  0x1e   :  { %p500_p1 = pnand %p499_p0, %p493_p11 }
  0x20   :  { %503 = shalt.err (!%p500_p1)
}
  0x21   :  { %s534_s0 = smov 128   ;;  %s535_s7 = smov 8  }
  0x22   :  { %32 = dma.hbm_to_vmem [thread:$0]  %s631_s1, 6144, %s562_s15, [#allocation6], %s534_s0, %s534_s0, %s535_s7  }
  0x23   :  { %526 = dma.done.wait [#allocation3], 128  }
  0x24   :  { %527 = vsyncadd [#allocation3], 4294967168 }
  0x25   :  { %528 = dma.done.wait [#allocation6], 6144  }
  0x26   :  { %529 = vsyncadd [#allocation6], 4294961152  ;;  %v536_v0 = vmov 0   ;;  %v537_v1 = vmov 0.0|0.0   ;;  %v41_v2 = vld [vmem:[#allocation2] sm:$0xff]  ;;  %v73_v3 = vld [vmem:[#allocation5 + $0x80] sm:$0xff]  ;;  %v49_v50 = vlaneseq }
  0x27   :  { %454 = vset.pattern.permute.xlu0 %v536_v0  ;;  %396 = vmatprep.subr.bf16.mxu0 %v537_v1  ;;  %v74_v4 = vld [vmem:[#allocation5 + $0x88] sm:$0xff]  ;;  %v75_v6 = vld [vmem:[#allocation5 + $0x90] sm:$0xff]  ;;  %v76_v7 = vld [vmem:[#allocation5 + $0x98] sm:$0xff]  ;;  %v538_v11 = vmov 1   ;;  %vm539_vm0 = vmmov 0   ;;  %v540_v15 = vmov 0.0  }
  0x28   :  { %420 = vmatprep.subr.bf16.mxu1 %v537_v1  ;;  %46 = vperm.xlu0 %454, %v41_v2   ;;  %v397_v5 = vpack.c.bf16 %v74_v4, %v73_v3  ;;  %v400_v8 = vpack.c.bf16 %v76_v7, %v75_v6  ;;  %v77_v9 = vld [vmem:[#allocation5 + $0xa0] sm:$0xff]  ;;  %v78_v10 = vld [vmem:[#allocation5 + $0xa8] sm:$0xff]  ;;  %v79_v13 = vld [vmem:[#allocation5 + $0xb0] sm:$0xff]  ;;  %v50_v51 = vshrl.u32 %v49_v50, 7  ;;  %s541_s15 = smov [#allocation7]  }
  0x29   :  { %v403_v12 = vpack.c.bf16 %v78_v10, %v77_v9  ;;  %v80_v14 = vld [vmem:[#allocation5 + $0xb8] sm:$0xff]  ;;  %358 = vmatprep.mubr.msk.f32.mxu0 %vm539_vm0, %v540_v15  ;;  %393 = vmatprep.mubr.msk.f32.mxu1 %vm539_vm0, %v540_v15  ;;  %v81_v17 = vld [vmem:[#allocation5 + $0xc0] sm:$0xff]  ;;  %v82_v18 = vld [vmem:[#allocation5 + $0xc8] sm:$0xff]  ;;  %s276_s16 = sshll.u32 %s541_s15, 4  ;;  %s277_s16 = int_to_ptr.vmem [resolvable:$true] %s276_s16 }
  0x2a   :  { %398 = vmatpush3.bf16.msra.mxu0 %v397_v5  ;;  %v406_v16 = vpack.c.bf16 %v80_v14, %v79_v13  ;;  %v169_v19 = vld [vmem:[#allocation5 + $0x100] sm:$0xff]  ;;  %v170_v20 = vld [vmem:[#allocation5 + $0x108] sm:$0xff]  ;;  %v171_v21 = vld [vmem:[#allocation5 + $0x110] sm:$0xff]  ;;  %v409_v22 = vpack.c.bf16 %v82_v18, %v81_v17  ;;  %v51_v52 = vsub.s32 0, %v50_v51  ;;  %v60_v53 = vsub.s32 1, %v50_v51  ;;  %s504_s17 = scalar_lea.vmem %s277_s16, 128  ;;  %p509_p3 = scmp.lt.s32.totalorder %s277_s16, %s277_s16 }
  0x2b   :  { %399 = vmatprep.subr.bf16.mxu0 %v537_v1  ;;  %v421_v23 = vpack.c.bf16 %v170_v20, %v169_v19  ;;  %v172_v24 = vld [vmem:[#allocation5 + $0x118] sm:$0xff]  ;;  %v83_v25 = vld [vmem:[#allocation5 + $0xd0] sm:$0xff]  ;;  %v173_v28 = vld [vmem:[#allocation5 + $0x120] sm:$0xff]  ;;  %p505_p2 = scmp.ne.s32.totalorder %s277_s16, %s504_s17  ;;  %p510_p4 = scmp.lt.s32.totalorder %s504_s17, %s504_s17 }
  0x2c   :  { %455 = vset.pattern.permute.xlu0 %v538_v11  ;;  %v84_v26 = vld [vmem:[#allocation5 + $0xd8] sm:$0xff]  ;;  %v424_v27 = vpack.c.bf16 %v172_v24, %v171_v21  ;;  %v174_v29 = vld [vmem:[#allocation5 + $0x128] sm:$0xff]  ;;  %v85_v31 = vld [vmem:[#allocation5 + $0xe0] sm:$0xff] }
  0x2d   :  { %55 = vperm.xlu0 %455, %v41_v2   ;;  %422 = vmatpush3.bf16.msra.mxu1 %v421_v23  ;;  %v412_v30 = vpack.c.bf16 %v84_v26, %v83_v25  ;;  %v86_v32 = vld [vmem:[#allocation5 + $0xe8] sm:$0xff]  ;;  %v427_v33 = vpack.c.bf16 %v174_v29, %v173_v28  ;;  %v175_v34 = vld [vmem:[#allocation5 + $0x130] sm:$0xff]  ;;  %v176_v35 = vld [vmem:[#allocation5 + $0x138] sm:$0xff]  ;;  %p511_p5 = por %p510_p4, %p509_p3 }
  0x2e   :  { %401 = vmatpush3.bf16.msra.mxu0 %v400_v8  ;;  %423 = vmatprep.subr.bf16.mxu1 %v537_v1  ;;  %v415_v36 = vpack.c.bf16 %v86_v32, %v85_v31  ;;  %v87_v37 = vld [vmem:[#allocation5 + $0xf0] sm:$0xff]  ;;  %v88_v38 = vld [vmem:[#allocation5 + $0xf8] sm:$0xff]  ;;  %v430_v39 = vpack.c.bf16 %v176_v35, %v175_v34  ;;  %v177_v40 = vld [vmem:[#allocation5 + $0x140] sm:$0xff] }
  0x2f   :  { %402 = vmatprep.subr.bf16.mxu0 %v537_v1  ;;  %v178_v41 = vld [vmem:[#allocation5 + $0x148] sm:$0xff]  ;;  %v418_v42 = vpack.c.bf16 %v88_v38, %v87_v37  ;;  %v179_v44 = vld [vmem:[#allocation5 + $0x150] sm:$0xff]  ;;  %v180_v45 = vld [vmem:[#allocation5 + $0x158] sm:$0xff]  ;;  %p512_p6 = pnand %p511_p5, %p505_p2 }
  0x30   :  { %v433_v43 = vpack.c.bf16 %v178_v41, %v177_v40  ;;  %v436_v46 = vpack.c.bf16 %v180_v45, %v179_v44  ;;  %v181_v47 = vld [vmem:[#allocation5 + $0x160] sm:$0xff]  ;;  %v182_v48 = vld [vmem:[#allocation5 + $0x168] sm:$0xff]  ;;  %v286_v61 = vld [vmem:[%s632_s2] ss:$0 sm:$0xff] }
  0x31   :  { %425 = vmatpush3.bf16.msra.mxu1 %v424_v27  ;;  %v439_v49 = vpack.c.bf16 %v182_v48, %v181_v47  ;;  %v42_v54 = vld [vmem:[#allocation5] sm:$0xff]  ;;  %v184_v2 = vld [vmem:[#allocation5 + $0x178] sm:$0xff] }
  0x32   :  { %404 = vmatpush3.bf16.msra.mxu0 %v403_v12  ;;  %426 = vmatprep.subr.bf16.mxu1 %v537_v1  ;;  %v52_v56 = vrot.slane %v42_v54, %v51_v52  ;;  %v61_v57 = vrot.slane %v42_v54, %v60_v53  ;;  %v288_v4 = vld [vmem:[%s632_s2 + $0x1] ss:$0 sm:$0xff]  ;;  %v290_v9 = vld [vmem:[%s632_s2 + $0x2] ss:$0 sm:$0xff] }
  0x33   :  { %405 = vmatprep.subr.bf16.mxu0 %v537_v1 }
  0x35   :  { %428 = vmatpush3.bf16.msra.mxu1 %v427_v33 }
  0x36   :  { %407 = vmatpush3.bf16.msra.mxu0 %v406_v16  ;;  %429 = vmatprep.subr.bf16.mxu1 %v537_v1 }
  0x37   :  { %408 = vmatprep.subr.bf16.mxu0 %v537_v1 }
  0x39   :  { %431 = vmatpush3.bf16.msra.mxu1 %v430_v39 }
  0x3a   :  { %410 = vmatpush3.bf16.msra.mxu0 %v409_v22  ;;  %432 = vmatprep.subr.bf16.mxu1 %v537_v1 }
  0x3b   :  { %411 = vmatprep.subr.bf16.mxu0 %v537_v1 }
  0x3d   :  { %434 = vmatpush3.bf16.msra.mxu1 %v433_v43 }
  0x3e   :  { %413 = vmatpush3.bf16.msra.mxu0 %v412_v30  ;;  %435 = vmatprep.subr.bf16.mxu1 %v537_v1 }
  0x3f   :  { %414 = vmatprep.subr.bf16.mxu0 %v537_v1 }
  0x41   :  { %437 = vmatpush3.bf16.msra.mxu1 %v436_v46 }
  0x42   :  { %416 = vmatpush3.bf16.msra.mxu0 %v415_v36  ;;  %438 = vmatprep.subr.bf16.mxu1 %v537_v1 }
  0x43   :  { %417 = vmatprep.subr.bf16.mxu0 %v537_v1 }
  0x45   :  { %440 = vmatpush3.bf16.msra.mxu1 %v439_v49 }
  0x46   :  { %419 = vmatpush3.bf16.msra.mxu0 %v418_v42  ;;  %441 = vmatprep.subr.bf16.mxu1 %v537_v1  ;;  %v183_v1 = vld [vmem:[#allocation5 + $0x170] sm:$0xff] }
  0x47   :  { %v442_v3 = vpack.c.bf16 %v184_v2, %v183_v1 }
  0x49   :  { %443 = vmatpush3.bf16.msra.mxu1 %v442_v3 }
  0xa7   :  { %v47_v55 = vpop.permute.xlu0 %46 }
  0xa8   :  { %v53_v59 = vmul.f32 %v52_v56, %v47_v55 }
  0xac   :  { %v56_v58 = vpop.permute.xlu0 %55 }
  0xad   :  { %v62_v60 = vmul.f32 %v61_v57, %v56_v58 }
  0xaf   :  { %v63_v62 = vadd.f32 %v62_v60, %v53_v59 }
  0xb1   :  { %v70_v63 = vadd.f32 %v286_v61, %v63_v62 }
  0xb3   :  { %v71_v0 = vmax.f32 %v70_v63, 0.0 }
  0xb5   :  { %359 = vmatmul.mubr.f32.vlgmr.msra.gmra.mrb[0].mxu0 %v71_v0 }
 0x188   :  { %v163_v5 = vpop.f32.mrb[0].mxu0 }
 0x189   :  { %v164_v6 = vadd.f32 %v288_v4, %v163_v5  ;;  %v360_v7 = vpop.f32.mrb[1].mxu0 }
 0x18b   :  { %v167_v8 = vmax.f32 %v164_v6, 0.0 }
 0x18d   :  { %394 = vmatmul.mubr.f32.vlgmr.msra.gmra.mrb[0].mxu1 %v167_v8 }
 0x260   :  { %v259_v10 = vpop.f32.mrb[0].mxu1 }
 0x261   :  { %v260_v11 = vadd.f32 %v290_v9, %v259_v10  ;;  %v395_v12 = vpop.f32.mrb[1].mxu1 }
 0x263   :  { %v291_v13 = vmul.f32 -1.442695, %v260_v11 }
 0x265   :  { %456 = vpow2.f32 %v291_v13 }
 0x26f   :  { %v457_v14 = vpop.eup %456 }
 0x270   :  { %v266_v15 = vadd.f32 1.0, %v457_v14 }
 0x272   :  { %458 = vrcp.f32 %v266_v15 }
 0x27c   :  { %v459_v16 = vpop.eup %458 }
 0x27d   :  { %269 = vst [vmem:[#allocation7] sm:$0xff] %v459_v16 }
 0x27e   :  { %515 = shalt.err (!%p512_p6)
}
 0x27f   :  { %s516_s19 = scalar_lea.hbm %s633_s3, 128 }
 0x280   :  { %p517_p7 = scmp.ne.s32.totalorder %s633_s3, %s516_s19  ;;  %p520_p8 = scmp.lt.u32.totalorder %s516_s19, %s633_s3 }
 0x282   :  { %p522_p9 = pnand %p520_p8, %p517_p7 }
 0x284   :  { %525 = shalt.err (!%p522_p9)
}
 0x285   :  { %279 = dma.vmem_to_hbm [thread:$0]  %s277_s16, 128, %s633_s3, [#allocation4]  }
 0x286   :  { %530 = dma.done.wait [#allocation4], 128  }
 0x287   :  { %531 = vsyncadd [#allocation4], 4294967168 }
 0x288   :  { %283 = vsyncpa [#allocation3], 1 }
 0x289   :  { %284 = vsyncpa [#allocation6], 1 }
 0x28a   :  { %285 = vsyncpa [#allocation4], 1 }

</bundles_post_ra>
